<compile_context>
chip_gen: v7x
topology: tpu7x:2x2x1
jax: 0.10.0
libtpu: 0.0.40
codegen_flags: <defaults>
</compile_context>

<pallas_src>
import jax
import jax.numpy as jnp
from jax.experimental import pallas as pl
from jax.experimental.pallas import tpu as pltpu

_LANE = 128
_MiB = 1024 * 1024


def _round_up(x, m):
    return (x + m - 1) // m * m


def _cdiv(a, b):
    return (a + b - 1) // b


def _vmem_budgets():
    """(per-buffer block budget, vmem_limit_bytes ceiling), per TPU generation."""
    try:
        vmem_bytes = int(pltpu.get_tpu_info().vmem_capacity_bytes)
    except Exception:
        vmem_bytes = 64 * _MiB          # conservative default (v7x-like)
    if vmem_bytes >= 128 * _MiB:
        # v5e / v6e: 128 MiB physical VMEM -> bigger blocks, higher ceiling.
        return 6 * _MiB, 64 * _MiB
    # v7x: 64 MiB per TensorCore -> keep headroom for scratch/pipelining.
    return 2 * _MiB, 36 * _MiB


def ca_module_forward(feat_map, w1, b1, w2, b2, *,
                      donate_input=False, max_block_bytes=None):
    """SE / channel-attention forward.

    feat_map: (B, C, H, W); w1: (C//r, C); b1: (C//r,); w2: (C, C//r); b2: (C,)
    donate_input: alias the output onto feat_map's buffer (caller must not
        reuse feat_map afterwards).
    max_block_bytes: override the per-buffer VMEM budget (testing / tuning).
    """
    B, C, H, W = feat_map.shape
    HW = H * W
    Cr = w1.shape[0]
    dtype = feat_map.dtype
    itemsize = jnp.dtype(dtype).itemsize

    budget, ceiling = _vmem_budgets()
    if max_block_bytes is not None:
        budget = int(max_block_bytes)

    x = feat_map.reshape(B, C, HW)              # metadata-only reshape
    inv_hw = 1.0 / float(HW)                    # divide by the TRUE H*W
    aliases = {0: 0} if donate_input else {}

    slab = C * HW * itemsize                                   # one batch row
    wbytes = 2 * 4 * (C * Cr + Cr + C * Cr + C)                # f32 params, 2-buffered
    fused_ok = (slab <= budget) and (4 * budget + wbytes + 2 * _MiB <= ceiling)

    # ------------------------------------------------------------------
    # Fast path: fused GAP + MLP + scale in a single pass over the tensor.
    # ------------------------------------------------------------------
    if fused_ok:
        bt = max(1, min(B, budget // slab))
        # Prefer an exact divisor of B when it costs < 2x (avoids ragged tail),
        # but do not collapse to tiny blocks for awkward/prime B.
        if B % bt != 0:
            best_div = max(d for d in range(1, bt + 1) if B % d == 0)
            if 2 * best_div >= bt:
                bt = best_div
        n_b = _cdiv(B, bt)
        # v7x has 2 TensorCores: make sure the (only) parallel axis has >= 2
        # iterations whenever B allows it.  Costs one extra ~0.35 us grid step
        # on single-TC parts; negligible.
        if n_b == 1 and B >= 2:
            bt = _cdiv(B, 2)
            n_b = _cdiv(B, bt)

        w1t = w1.astype(jnp.float32).T.reshape(C, Cr)    # (C, Cr)
        w2t = w2.astype(jnp.float32).T.reshape(Cr, C)    # (Cr, C)
        b1r = b1.astype(jnp.float32).reshape(1, Cr)
        b2r = b2.astype(jnp.float32).reshape(1, C)

        def fused_kernel(x_ref, w1_ref, b1_ref, w2_ref, b2_ref, o_ref):
            # x_ref/o_ref: (bt, C, HW)  (full C and HW -> no lane padding needed)
            x_blk = x_ref[...]
            # GAP with f32 accumulation, no f32 copy of the block.
            gap = jnp.sum(x_blk, axis=2, dtype=jnp.float32) * inv_hw     # (bt, C)
            h = jnp.dot(gap, w1_ref[...], preferred_element_type=jnp.float32)
            h = jnp.maximum(h + b1_ref[...], 0.0)                         # (bt, Cr)
            z = jnp.dot(h, w2_ref[...], preferred_element_type=jnp.float32)
            z = z + b2_ref[...]                                           # (bt, C)
            s = 1.0 / (1.0 + jnp.exp(-z))                                 # sigmoid (EUP)
            # Multiply in the native dtype; broadcast scale over the lane axis.
            o_ref[...] = x_blk * s[:, :, None].astype(o_ref.dtype)

        blk = bt * C * HW * itemsize
        vmem_limit = int(min(max(4 * blk + wbytes + 2 * _MiB, 16 * _MiB), ceiling))

        out = pl.pallas_call(
            fused_kernel,
            out_shape=jax.ShapeDtypeStruct((B, C, HW), dtype),
            grid_spec=pltpu.PrefetchScalarGridSpec(
                num_scalar_prefetch=0,
                grid=(n_b,),
                in_specs=[
                    pl.BlockSpec((bt, C, HW), lambda b: (b, 0, 0)),
                    pl.BlockSpec((C, Cr), lambda b: (0, 0)),   # resident params
                    pl.BlockSpec((1, Cr), lambda b: (0, 0)),
                    pl.BlockSpec((Cr, C), lambda b: (0, 0)),
                    pl.BlockSpec((1, C), lambda b: (0, 0)),
                ],
                out_specs=pl.BlockSpec((bt, C, HW), lambda b: (b, 0, 0)),
            ),
            compiler_params=pltpu.CompilerParams(
                dimension_semantics=("parallel",),
                vmem_limit_bytes=vmem_limit),
            input_output_aliases=aliases,
        )(x, w1t, b1r, w2t, b2r)
        return out.reshape(B, C, H, W)

    # ------------------------------------------------------------------
    # Fallback: feature map too large to hold one batch row in VMEM.
    # Pass 1: tiled GAP reduction.  Pass 2: broadcast scale.  No HBM padding;
    # the ragged spatial tail is masked in-kernel / by masked boundary stores.
    # ------------------------------------------------------------------
    tile = (budget // (C * itemsize)) // _LANE * _LANE
    if tile >= 512:
        tile = tile // 512 * 512
    tile = max(tile, _LANE)
    tile = min(tile, _round_up(HW, _LANE))
    n_t = _cdiv(HW, tile)
    ragged = (HW % tile) != 0

    # v7x: with B == 1 the batch axis has a single parallel iteration; split the
    # spatial reduction into 2 partial sums (combined in XLA) when it divides.
    n_split = 2 if (B == 1 and n_t >= 2 and n_t % 2 == 0) else 1
    tiles_per_split = n_t // n_split

    def gap_kernel(x_ref, sum_ref):
        # x_ref: (1, C, tile); sum_ref: (1, C, 1) f32, resident across axis 1.
        t = pl.program_id(1)

        @pl.when(t == 0)
        def _():
            sum_ref[...] = jnp.zeros_like(sum_ref)

        x_blk = x_ref[...]
        if ragged:
            # Mask lanes past the true H*W (boundary-block contents are
            # unspecified); mask uses the global spatial index so it is also
            # correct for the split halves.
            g = pl.program_id(0)
            start = ((g % n_split) * tiles_per_split + t) * tile
            lane = jax.lax.broadcasted_iota(jnp.int32, x_blk.shape, 2)
            x_blk = jnp.where(start + lane < HW, x_blk, 0)
        sum_ref[...] += jnp.sum(x_blk, axis=2, dtype=jnp.float32, keepdims=True)

    blk = C * tile * itemsize
    vmem_limit = int(min(max(4 * blk + 2 * _MiB, 16 * _MiB), ceiling))

    sums = pl.pallas_call(
        gap_kernel,
        out_shape=jax.ShapeDtypeStruct((B * n_split, C, 1), jnp.float32),
        grid_spec=pltpu.PrefetchScalarGridSpec(
            num_scalar_prefetch=0,
            grid=(B * n_split, tiles_per_split),
            in_specs=[pl.BlockSpec(
                (1, C, tile),
                lambda g, t: (g // n_split, 0, (g % n_split) * tiles_per_split + t))],
            out_specs=pl.BlockSpec((1, C, 1), lambda g, t: (g, 0, 0)),
        ),
        compiler_params=pltpu.CompilerParams(
            dimension_semantics=("parallel", "arbitrary"),
            vmem_limit_bytes=vmem_limit),
    )(x)

    gap = sums.reshape(B, n_split, C).sum(axis=1) * inv_hw              # (B, C)

    # Tiny SE MLP, batched over B, in XLA (negligible FLOPs, off the kernel path).
    h = jax.nn.relu(gap @ w1.astype(jnp.float32).T + b1.astype(jnp.float32))
    s = jax.nn.sigmoid(h @ w2.astype(jnp.float32).T + b2.astype(jnp.float32))
    s = s[:, :, None].astype(dtype)                                      # (B, C, 1)

    def scale_kernel(x_ref, s_ref, o_ref):
        # Native-dtype multiply; boundary (ragged-tail) stores are masked by Pallas.
        o_ref[...] = x_ref[...] * s_ref[...]

    out = pl.pallas_call(
        scale_kernel,
        out_shape=jax.ShapeDtypeStruct((B, C, HW), dtype),
        grid_spec=pltpu.PrefetchScalarGridSpec(
            num_scalar_prefetch=0,
            grid=(B, n_t),
            in_specs=[
                pl.BlockSpec((1, C, tile), lambda b, t: (b, 0, t)),
                pl.BlockSpec((1, C, 1), lambda b, t: (b, 0, 0)),
            ],
            out_specs=pl.BlockSpec((1, C, tile), lambda b, t: (b, 0, t)),
        ),
        compiler_params=pltpu.CompilerParams(
            dimension_semantics=("parallel", "parallel"),
            vmem_limit_bytes=vmem_limit),
        input_output_aliases=aliases,
    )(x, s)

    return out.reshape(B, C, H, W)


def _reference(feat_map, w1, b1, w2, b2):
    B, C, H, W = feat_map.shape
    gap = feat_map.reshape(B, C, -1).mean(axis=2)                 # (B, C)
    h = jax.nn.relu(gap @ w1.T + b1)                              # (B, C//r)
    s = jax.nn.sigmoid(h @ w2.T + b2)                             # (B, C)
    return feat_map * s[:, :, None, None]


if __name__ == "__main__":
    key = jax.random.PRNGKey(0)

    def make_params(k, C, r):
        Cr = C // r
        k1, k2, k3, k4 = jax.random.split(k, 4)
        w1 = jax.random.normal(k1, (Cr, C), dtype=jnp.float32) * 0.1   # fc1.weight
        b1 = jax.random.normal(k2, (Cr,), dtype=jnp.float32) * 0.1     # fc1.bias
        w2 = jax.random.normal(k3, (C, Cr), dtype=jnp.float32) * 0.1   # fc2.weight
        b2 = jax.random.normal(k4, (C,), dtype=jnp.float32) * 0.1      # fc2.bias
        return w1, b1, w2, b2

    k0, k1, k2, k3 = jax.random.split(key, 4)

    # Test 1: fused single-pass fast path (typical SE shape, small).
    B, C, H, W = 2, 16, 16, 16
    feat = jax.random.normal(k0, (B, C, H, W), dtype=jnp.float32)
    w1, b1, w2, b2 = make_params(k1, C, 2)
    out = jax.block_until_ready(ca_module_forward(feat, w1, b1, w2, b2))
    ref = _reference(feat, w1, b1, w2, b2)
    assert out.shape == feat.shape
    assert jnp.allclose(out, ref, atol=1e-5, rtol=1e-5), "fused path mismatch"

    # Test 2: two-pass fallback with a ragged (non-128-multiple) spatial extent
    # and the B==1 two-way spatial split, forced via a tiny block budget.
    B, C, H, W = 1, 8, 15, 15
    feat = jax.random.normal(k2, (B, C, H, W), dtype=jnp.float32)
    w1, b1, w2, b2 = make_params(k3, C, 2)
    out = jax.block_until_ready(
        ca_module_forward(feat, w1, b1, w2, b2, max_block_bytes=4096))
    ref = _reference(feat, w1, b1, w2, b2)
    assert out.shape == feat.shape
    assert jnp.allclose(out, ref, atol=1e-5, rtol=1e-5), "fallback path mismatch"

    print("KERNEL_OK")
</pallas_src>

<mosaic_0001>
module attributes {stable_mosaic.version = 11 : i64} {
  func.func @fused_kernel(%arg0: i32, %arg1: memref<1x16x256xf32, #tpu.memory_space<vmem>>, %arg2: memref<16x8xf32, #tpu.memory_space<vmem>>, %arg3: memref<1x8xf32, #tpu.memory_space<vmem>>, %arg4: memref<8x16xf32, #tpu.memory_space<vmem>>, %arg5: memref<1x16xf32, #tpu.memory_space<vmem>>, %arg6: memref<1x16x256xf32, #tpu.memory_space<vmem>>) attributes {dimension_semantics = [#tpu.dimension_semantics<parallel>], iteration_bounds = array<i64: 2>, scalar_prefetch = 0 : i64, scratch_operands = 0 : i64, tpu.core_type = #tpu.core_type<tc>, window_params = [{transform_indices = @transform_0, window_bounds = array<i64: 1, 16, 256>}, {pipeline_mode = #tpu.pipeline_mode<synchronous>, transform_indices = @transform_1, window_bounds = array<i64: 16, 8>}, {pipeline_mode = #tpu.pipeline_mode<synchronous>, transform_indices = @transform_2, window_bounds = array<i64: 1, 8>}, {pipeline_mode = #tpu.pipeline_mode<synchronous>, transform_indices = @transform_3, window_bounds = array<i64: 8, 16>}, {pipeline_mode = #tpu.pipeline_mode<synchronous>, transform_indices = @transform_4, window_bounds = array<i64: 1, 16>}, {transform_indices = @transform_5, window_bounds = array<i64: 1, 16, 256>}]} {
    %c0 = arith.constant 0 : index
    %c0_0 = arith.constant 0 : index
    %c0_1 = arith.constant 0 : index
    %0 = vector.load %arg1[%c0, %c0_0, %c0_1] : memref<1x16x256xf32, #tpu.memory_space<vmem>>, vector<1x16x256xf32>
    %cst = arith.constant dense<0.000000e+00> : vector<1x16xf32>
    %1 = vector.multi_reduction <add>, %0, %cst [2] : vector<1x16x256xf32> to vector<1x16xf32>
    %cst_2 = arith.constant 3.906250e-03 : f32
    %2 = vector.broadcast %cst_2 : f32 to vector<1x16xf32>
    %3 = arith.mulf %1, %2 : vector<1x16xf32>
    %c0_3 = arith.constant 0 : index
    %c0_4 = arith.constant 0 : index
    %4 = vector.load %arg2[%c0_3, %c0_4] : memref<16x8xf32, #tpu.memory_space<vmem>>, vector<16x8xf32>
    %cst_5 = arith.constant dense<0.000000e+00> : vector<1x8xf32>
    %5 = tpu.matmul %3, %4, %cst_5 {dimension_numbers = #tpu.dot_dimension_numbers<[1], [0], [0], [1], [0, 0, 1, 1], [], []>} : vector<1x16xf32>, vector<16x8xf32>, vector<1x8xf32> -> vector<1x8xf32>
    %c0_6 = arith.constant 0 : index
    %c0_7 = arith.constant 0 : index
    %6 = vector.load %arg3[%c0_6, %c0_7] : memref<1x8xf32, #tpu.memory_space<vmem>>, vector<1x8xf32>
    %7 = arith.addf %5, %6 : vector<1x8xf32>
    %cst_8 = arith.constant 0.000000e+00 : f32
    %8 = vector.broadcast %cst_8 : f32 to vector<1x8xf32>
    %9 = arith.maximumf %7, %8 : vector<1x8xf32>
    %c0_9 = arith.constant 0 : index
    %c0_10 = arith.constant 0 : index
    %10 = vector.load %arg4[%c0_9, %c0_10] : memref<8x16xf32, #tpu.memory_space<vmem>>, vector<8x16xf32>
    %cst_11 = arith.constant dense<0.000000e+00> : vector<1x16xf32>
    %11 = tpu.matmul %9, %10, %cst_11 {dimension_numbers = #tpu.dot_dimension_numbers<[1], [0], [0], [1], [0, 0, 1, 1], [], []>} : vector<1x8xf32>, vector<8x16xf32>, vector<1x16xf32> -> vector<1x16xf32>
    %c0_12 = arith.constant 0 : index
    %c0_13 = arith.constant 0 : index
    %12 = vector.load %arg5[%c0_12, %c0_13] : memref<1x16xf32, #tpu.memory_space<vmem>>, vector<1x16xf32>
    %13 = arith.addf %11, %12 : vector<1x16xf32>
    %cst_14 = arith.constant 0.000000e+00 : f32
    %14 = vector.broadcast %cst_14 : f32 to vector<1x16xf32>
    %15 = arith.subf %14, %13 : vector<1x16xf32>
    %16 = math.exp %15 : vector<1x16xf32>
    %cst_15 = arith.constant 1.000000e+00 : f32
    %17 = vector.broadcast %cst_15 : f32 to vector<1x16xf32>
    %18 = arith.addf %17, %16 : vector<1x16xf32>
    %cst_16 = arith.constant 1.000000e+00 : f32
    %19 = vector.broadcast %cst_16 : f32 to vector<1x16xf32>
    %20 = arith.divf %19, %18 : vector<1x16xf32>
    %21 = vector.shape_cast %20 : vector<1x16xf32> to vector<1x16x1xf32>
    %22 = vector.broadcast %21 : vector<1x16x1xf32> to vector<1x16x256xf32>
    %23 = arith.mulf %0, %22 : vector<1x16x256xf32>
    %c0_17 = arith.constant 0 : index
    %c0_18 = arith.constant 0 : index
    %c0_19 = arith.constant 0 : index
    %24 = vector.load %arg6[%c0_17, %c0_18, %c0_19] : memref<1x16x256xf32, #tpu.memory_space<vmem>>, vector<1x16x256xf32>
    tpu.vector_store %arg6[%c0_17, %c0_18, %c0_19], %23 {strides = array<i32>} : memref<1x16x256xf32, #tpu.memory_space<vmem>>, vector<1x16x256xf32>,
    return
  }
  func.func @transform_0(%arg0: i32) -> (i32, i32, i32) {
    %c0_i32 = arith.constant 0 : i32
    %c0_i32_0 = arith.constant 0 : i32
    %c0_i32_1 = arith.constant 0 : i32
    return %arg0, %c0_i32, %c0_i32_0 : i32, i32, i32
  }
  func.func @transform_1(%arg0: i32) -> (i32, i32) {
    %c0_i32 = arith.constant 0 : i32
    %c0_i32_0 = arith.constant 0 : i32
    %c0_i32_1 = arith.constant 0 : i32
    return %c0_i32, %c0_i32_0 : i32, i32
  }
  func.func @transform_2(%arg0: i32) -> (i32, i32) {
    %c0_i32 = arith.constant 0 : i32
    %c0_i32_0 = arith.constant 0 : i32
    %c0_i32_1 = arith.constant 0 : i32
    return %c0_i32, %c0_i32_0 : i32, i32
  }
  func.func @transform_3(%arg0: i32) -> (i32, i32) {
    %c0_i32 = arith.constant 0 : i32
    %c0_i32_0 = arith.constant 0 : i32
    %c0_i32_1 = arith.constant 0 : i32
    return %c0_i32, %c0_i32_0 : i32, i32
  }
  func.func @transform_4(%arg0: i32) -> (i32, i32) {
    %c0_i32 = arith.constant 0 : i32
    %c0_i32_0 = arith.constant 0 : i32
    %c0_i32_1 = arith.constant 0 : i32
    return %c0_i32, %c0_i32_0 : i32, i32
  }
  func.func @transform_5(%arg0: i32) -> (i32, i32, i32) {
    %c0_i32 = arith.constant 0 : i32
    %c0_i32_0 = arith.constant 0 : i32
    %c0_i32_1 = arith.constant 0 : i32
    return %arg0, %c0_i32, %c0_i32_0 : i32, i32, i32
  }
}

</mosaic_0001>

<bundles_post_ra>
// kernel: tpu_custom_call.1
= control target key start
LH: loop header
LB: loop body
LE: loop exit
PB: predicated region body
PF: predicated region fallthrough
CT: control target
= control target key end

     0   :  { %10 = vsyncpa [#allocation3], 0  ;;  %s956_s0 = inlined_call_operand.hbm [shape: f32[2,16,256], index: 0, kind: input, shape index: {}]   ;;  %s957_s1 = inlined_call_operand.vmem [shape: f32[16,8], index: 1, kind: input, shape index: {}]   ;;  %s958_s2 = inlined_call_operand.vmem [shape: f32[1,8], index: 2, kind: input, shape index: {}]   ;;  %s959_s3 = inlined_call_operand.vmem [shape: f32[8,16], index: 3, kind: input, shape index: {}]   ;;  %s960_s4 = inlined_call_operand.vmem [shape: f32[1,16], index: 4, kind: input, shape index: {}]   ;;  %s961_s5 = inlined_call_operand.hbm [shape: f32[2,16,256], index: 5, kind: output, shape index: {}]  }
   0x1   :  { %12 = vsyncpa [#allocation3 + $0x1], 0 }
   0x2   :  { %13 = vsyncpa [#allocation4], 0 }
   0x3   :  { %15 = vsyncpa [#allocation4 + $0x1], 0  ;;  %s767_s18 = smov 0   ;;  %s769_s19 = smov 0  }
   0x4   :  { %s771_s20 = smov 0   ;;  %s773_s21 = smov 0  }
   0x5 LB: > { %s788_s22 = sadd.s32 4294967295, %s726_s21   ;;  %s535_s23 = sadd.s32 4294967294, %s726_s21   ;;  %s726_s21 = sphi %s773_s21, %s974_s21   ;;  %s722_s20 = sphi %s771_s20, %s973_s20   ;;  %s718_s19 = sphi %s769_s19, %s972_s19   ;;  %s714_s18 = sphi %s767_s18, %s971_s18  }
   0x6   : > { %s792_s24 = sadd.s32 1, %s726_s21   ;;  %s28_s25 = sadd.s32 1, %s722_s20 }
   0x7   : > { %s25_s26 = ssub.s32 %s726_s21, %s792_s24  ;;  %p35_p0 = scmp.ne.s32.totalorder %s722_s20, %s718_s19 }
   0x8   : > { %p26_p1 = scmp.eq.s32.totalorder %s25_s26, 0  ;;  %p36_p2 = scmp.eq.s32.totalorder %s726_s21, 0 }
   0x9   : > { %p41_p3 = scmp.ne.s32.totalorder %s718_s19, %s714_s18  ;;  %p42_p4 = scmp.eq.s32.totalorder %s788_s22, 0 }
   0xa   : > { %s804_s27 = scalar_select %p26_p1, %s722_s20, %s28_s25  }
   0xb   : > { %p806_p5 = por %p36_p2, %p35_p0  ;;  %p810_p6 = por %p42_p4, %p41_p3 }
   0xc   : > { %p149_p7 = scmp.eq.s32.totalorder %s788_s22, 1  ;;  %p155_p8 = scmp.eq.s32.totalorder %s535_s23, 1 }
   0xd   : > { %p585_p10 = scmp.lt.s32.totalorder %s726_s21, 2  ;;  %s187_s7 = sand.u32 1, %s722_s20  }
   0xe   : > { %p817_p11 = por %p149_p7, %p35_p0  ;;  %p821_p12 = por %p155_p8, %p41_p3 }
   0xf   : > { %s551_s8 = sshll.u32 %s726_s21, 9  ;;  %s538_s9 = sshll.u32 %s187_s7, 5 }
  0x10   : > { %s965_s30 = scalar_select %p817_p11, 1, 0 }
  0x11   : > { %s966_s6 = scalar_select %p821_p12, 1, 0 }
  0x12   : > { %s830_s12 = scalar_lea.hbm %s956_s0, %s551_s8  ;;  %s191_s13 = scalar_lea.vmem [#allocation2], %s538_s9 }
  0x13   : > { %s198_s14 = sshll.u32 %s191_s13, 4  ;;  %p834_p13 = pnand %p585_p10, %p806_p5  ;;  %s838_s14 = int_to_ptr.vmem [resolvable:$true] %s198_s14 }
  0x14   : > { %s840_s16 = scalar_lea.sflag [#allocation3], %s187_s7  ;;  %s630_s17 = scalar_lea.hbm %s830_s12, 512 }
  0x15   : > { %p631_p0 = scmp.ne.s32.totalorder %s830_s12, %s630_s17  ;;  %p632_p1 = pneg %p834_p13 }
  0x16   : > { %s635_s26 = scalar_lea.hbm %s956_s0, 1024  ;;  %p636_p4 = scmp.lt.u32.totalorder %s830_s12, %s956_s0 }
  0x17   : > { %p633_p2 = pnand %p632_p1, %p631_p0  ;;  %p637_p5 = scmp.lt.u32.totalorder %s635_s26, %s630_s17 }
  0x18   : > { %p639_p8 = scmp.lt.u32.totalorder %s630_s17, %s830_s12 }
  0x19   : > { %p634_p3 = pneg %p633_p2  ;;  %p638_p7 = por %p637_p5, %p636_p4 }
  0x1b   : > { %p640_p10 = por %p639_p8, %p638_p7 }
  0x1d   : > { %p641_p9 = pnand %p640_p10, %p634_p3 }
  0x1f   : > { %644 = shalt.err (!%p641_p9)
}
  0x20   : > { %s645_s7 = scalar_lea.vmem %s838_s14, 512  ;;  %s728_s9 = smov [#allocation2]  }
  0x21   : > { %p646_p0 = scmp.ne.s32.totalorder %s838_s14, %s645_s7  ;;  %s650_s10 = sshll.u32 %s728_s9, 4  ;;  %s651_s10 = int_to_ptr.vmem [resolvable:$false] %s650_s10 }
  0x22   : > { %s652_s11 = scalar_lea.vmem %s651_s10, 1024  ;;  %p653_p11 = scmp.lt.s32.totalorder %s838_s14, %s651_s10 }
  0x23   : > { %p648_p2 = pnand %p646_p0, %p632_p1  ;;  %p654_p4 = scmp.lt.s32.totalorder %s652_s11, %s645_s7 }
  0x25   : > { %p649_p12 = pneg %p648_p2  ;;  %p655_p5 = por %p654_p4, %p653_p11 }
  0x27   : > { %p656_p7 = pnand %p655_p5, %p649_p12 }
  0x29   : > { %659 = shalt.err (!%p656_p7)
}
  0x2a   : > { %s729_s13 = smov 256   ;;  %s730_s17 = smov 16  }
  0x2b   : > { %580 = dma.hbm_to_vmem [thread:$0]  (!%p834_p13), %s830_s12, 512, %s838_s14, %s840_s16, %s729_s13, %s729_s13, %s730_s17  }
  0x2c   : > { %p541_p9 = scmp.ge.s32.totalorder %s726_s21, 1  ;;  %p206_p1 = scmp.lt.s32.totalorder %s726_s21, 3 }
  0x2e   : > { %p207_p3 = pnand %p541_p9, %p206_p1 }
  0x2f   : > { %s871_s23 = sand.u32 (!%p207_p3), 1, %s718_s19  }
  0x30   : > { %210 = sbr.rel (%p207_p3) target bundleno = 806 (0x326), region = 40  ;;  %s542_s25 = sshll.u32 (!%p207_p3), %s871_s23, 5 }
  0x31   : > { %s213_s26 = scalar_lea.sflag (!%p207_p3), [#allocation3], %s871_s23  ;;  %s216_s28 = scalar_lea.vmem (!%p207_p3), [#allocation2], %s542_s25 }
  0x37   : > { %705 = dma.done.wait (%p810_p6), %s213_s26, 512  }
  0x38   : > { %707 = vsyncadd (%p810_p6), %s213_s26, 4294966784  ;;  %v243_v0 = vld [vmem:[%s216_s28] sm:$0xff]  ;;  %v244_v1 = vld [vmem:[%s216_s28 + $0x8] sm:$0xff]  ;;  %v731_v9 = vmov 0.0|0.0   ;;  %vm732_vm0 = vmmov 0   ;;  %v733_v10 = vmov 0.0   ;;  %v260_v11 = vlaneseq }
  0x39   : > { %v881_v2 = vld [vmem:[%s216_s28 + $0x10] sm:$0xff]  ;;  %v247_v3 = vadd.f32 %v244_v1, %v243_v0  ;;  %v883_v4 = vld [vmem:[%s216_s28 + $0x18] sm:$0xff]  ;;  %v255_v6 = vld [vmem:[%s957_s1] sm:$0xff]  ;;  %570 = vmatprep.subr.bf16.mxu0 %v731_v9  ;;  %562 = vmatprep.mubr.msk.f32.mxu0 %vm732_vm0, %v733_v10  ;;  %vm271_vm1 = vcmask 130112   ;;  %vm273_vm2 = vcmask 130048   ;;  %vm349_vm3 = vcmask 64512  }
  0x3a   : > { %v250_v5 = vadd.f32 %v883_v4, %v881_v2  ;;  %v256_v7 = vld [vmem:[%s957_s1 + $0x8] sm:$0xff]  ;;  %565 = vmatprep.subr.mxu1 %v733_v10  ;;  %567 = vmatprep.mubr.msk.f32.mxu1 %vm732_vm0, %v733_v10  ;;  %v261_v12 = vand.u32 127, %v260_v11  ;;  %v263_v13 = vshrl.u32 %v260_v11, 7  ;;  %v347_v24 = vld [vmem:[%s959_s3] sm:$0xff]  ;;  %s242_s13 = scalar_lea.vmem [#allocation5], %s542_s25  ;;  %s552_s26 = sshll.u32 %s788_s22, 9 }
  0x3b   : > { %248 = vadd.xlane.f32.xlu0 %v247_v3  ;;  %v571_v8 = vpack.c.bf16 %v256_v7, %v255_v6  ;;  %566 = vmatpush3.msra.mxu1 %v347_v24  ;;  %v257_v25 = vld [vmem:[%s958_s2] sm:$0x1]  ;;  %s462_s17 = sshll.u32 %s242_s13, 4  ;;  %s910_s14 = scalar_lea.hbm %s961_s5, %s552_s26  ;;  %s905_s17 = int_to_ptr.vmem [resolvable:$true] %s462_s17 }
  0x3c   : > { %v266_v14 = vadd.s32 4294967288, %v261_v12  ;;  %v264_v16 = vsub.s32 %v261_v12, %v263_v13  ;;  %v348_v30 = vld [vmem:[%s960_s4] sm:$0x1]  ;;  %v431_v38 = vsub.s32 0, %v263_v13  ;;  %s449_s22 = scalar_lea.sflag [#allocation4], %s871_s23  ;;  %s660_s25 = scalar_lea.vmem %s905_s17, 512 }
  0x3d   : > { %572 = vmatpush3.bf16.msra.mxu0 %v571_v8  ;;  %p661_p6 = scmp.ne.s32.totalorder %s905_s17, %s660_s25  ;;  %p968_p11 = scmp.ne.s32.totalorder %s965_s30, 0 }
  0x3e   : > { %v269_v18 = vsub.s32 %v266_v14, %v263_v13  ;;  %s734_s15 = smov [#allocation5]  }
  0x3f   : > { %251 = vadd.xlane.f32.xlu0 %v250_v5  ;;  %p662_p12 = pnand %p661_p6, %p968_p11  ;;  %s664_s16 = sshll.u32 %s734_s15, 4  ;;  %s665_s16 = int_to_ptr.vmem [resolvable:$false] %s664_s16 }
  0x40   : > { %s666_s29 = scalar_lea.vmem %s665_s16, 1024  ;;  %p667_p8 = scmp.lt.s32.totalorder %s905_s17, %s665_s16 }
  0x41   : > { %p663_p13 = pneg %p662_p12  ;;  %p668_p10 = scmp.lt.s32.totalorder %s666_s29, %s660_s25 }
  0x43   : > { %p669_p0 = por %p668_p10, %p667_p8 }
  0x45   : > { %p670_p2 = pnand %p669_p0, %p663_p13 }
  0xc8   : > { %v249_v15 = vpop.xlane.xlu0 %248 }
  0xc9   : > { %v253_v17 = vmul.f32 0.00390625, %v249_v15 }
  0xcb   : > { %v265_v21 = vrot.slane %v253_v17, %v264_v16 }
  0xcc   : > { %v252_v19 = vpop.xlane.xlu0 %251 }
  0xcd   : > { %v254_v20 = vmul.f32 0.00390625, %v252_v19 }
  0xcf   : > { %v270_v22 = vrot.slane %v254_v20, %v269_v18 }
  0xd1   : > { %v272_v23 = vsel %vm271_vm1, %v270_v22, %v265_v21 }
  0xd2   : > { %563 = vmatmul.mubr.msk.f32.vlgmr.msra.gmra.mrb[0].mxu0 %vm273_vm2, %v272_v23 }
 0x1a5   : > { %v342_v26 = vpop.f32.mrb[0].mxu0 }
 0x1a6   : > { %v343_v27 = vadd.f32 %v342_v26, %v257_v25  ;;  %v564_v28 = vpop.f32.mrb[1].mxu0 }
 0x1a8   : > { %v346_v29 = vmax.f32 %v343_v27, 0.0 }
 0x1aa   : > { %568 = vmatmul.mubr.msk.f32.vlgmr.msra.gmra.mrb[0].mxu1 %vm349_vm3, %v346_v29 }
 0x27d   : > { %v419_v31 = vpop.f32.mrb[0].mxu1 }
 0x27e   : > { %v420_v32 = vadd.f32 %v419_v31, %v348_v30  ;;  %v569_v33 = vpop.f32.mrb[1].mxu1 }
 0x280   : > { %v423_v34 = vsub.f32 0.0, %v420_v32 }
 0x282   : > { %v424_v35 = vmul.f32 1.442695, %v423_v34 }
 0x284   : > { %626 = vpow2.f32 %v424_v35 }
 0x28e   : > { %v627_v36 = vpop.eup %626 }
 0x28f   : > { %v426_v37 = vadd.f32 1.0, %v627_v36 }
 0x291   : > { %628 = vrcp.f32 %v426_v37 }
 0x29b   : > { %v629_v39 = vpop.eup %628 }
 0x29c   : > { %v432_v40 = vrot.slane %v629_v39, %v431_v38 }
 0x29e   : > { %434 = vbcast.lane.b32.xlu1 %v432_v40, 256 }
 0x2a2   : > { %438 = vbcast.lane.b32.xlu1 %v432_v40, 264 }
 0x310   : > { %v435_v41 = vpop.permute.xlu1 %434 }
 0x311   : > { %v440_v42 = vmul.f32 %v435_v41, %v243_v0  ;;  %v441_v43 = vmul.f32 %v435_v41, %v244_v1 }
 0x313   : > { %444 = vst [vmem:[%s242_s13] sm:$0xff] %v440_v42  ;;  %445 = vst [vmem:[%s242_s13 + $0x8] sm:$0xff] %v441_v43 }
 0x314   : > { %v439_v44 = vpop.permute.xlu1 %438 }
 0x315   : > { %v442_v45 = vmul.f32 %v439_v44, %v881_v2  ;;  %v443_v46 = vmul.f32 %v439_v44, %v883_v4 }
 0x317   : > { %446 = vst [vmem:[%s242_s13 + $0x10] sm:$0xff] %v442_v45  ;;  %447 = vst [vmem:[%s242_s13 + $0x18] sm:$0xff] %v443_v46 }
 0x318   : > { %673 = shalt.err (!%p670_p2)
}
 0x319   : > { %s674_s8 = scalar_lea.hbm %s910_s14, 512  ;;  %s678_s10 = scalar_lea.hbm %s961_s5, 1024 }
 0x31a   : > { %p675_p4 = scmp.ne.s32.totalorder %s910_s14, %s674_s8  ;;  %p679_p9 = scmp.lt.u32.totalorder %s910_s14, %s961_s5 }
 0x31b   : > { %p680_p1 = scmp.lt.u32.totalorder %s678_s10, %s674_s8  ;;  %p682_p6 = scmp.lt.u32.totalorder %s674_s8, %s910_s14 }
 0x31c   : > { %p676_p5 = pnand %p675_p4, %p968_p11 }
 0x31d   : > { %p681_p3 = por %p680_p1, %p679_p9 }
 0x31e   : > { %p677_p7 = pneg %p676_p5 }
 0x31f   : > { %p683_p12 = por %p682_p6, %p681_p3 }
 0x321   : > { %p684_p13 = pnand %p683_p12, %p677_p7 }
 0x323   : > { %687 = shalt.err (!%p684_p13)
}
 0x324   : > { %s735_s26 = smov 256   ;;  %s736_s28 = smov 16  }
 0x325   : > { %575 = dma.vmem_to_hbm [thread:$0]  (%p968_p11), %s905_s17, 512, %s910_s14, %s449_s22, %s735_s26, %s735_s26, %s736_s28  }
 0x326 PF: > { %s477_s12 = sand.u32 1, %s714_s18   ;;  %p969_p8 = scmp.ne.s32.totalorder %s966_s6, 0 }
 0x327   : > { %p970_p10 = scmp.ge.s32.totalorder %s726_s21, 2  ;;  %s478_s25 = scalar_lea.sflag [#allocation4], %s477_s12 }
 0x329   : > { %p582_p0 = pnand %p970_p10, %p969_p8 }
 0x32b   : > { %709 = dma.done.wait (!%p582_p0), %s478_s25, 512  }
 0x32c   : > { %711 = vsyncadd (!%p582_p0), %s478_s25, 4294966784  ;;  %p18_p2 = scmp.ge.s32.totalorder %s792_s24, 4   ;;  %s971_s18 = smov %s718_s19 }
 0x32d   : > { %s972_s19 = smov %s722_s20  ;;  %s973_s20 = smov %s804_s27 }
 0x32e   : > { %s974_s21 = smov %s792_s24  ;;  %20 = sbr.rel (!%p18_p2) target bundleno = 5 (0x5), region = 85 }
 0x335   :  { %483 = vsyncpa [#allocation3], 1 }
 0x336   :  { %485 = vsyncpa [#allocation3 + $0x1], 1 }
 0x337   :  { %486 = vsyncpa [#allocation4], 1 }
 0x338   :  { %488 = vsyncpa [#allocation4 + $0x1], 1 }

</bundles_post_ra>
